<compile_context>
chip_gen: v5e
topology: v5e:2x2
jax: 0.10.0
libtpu: 0.0.40
codegen_flags: <defaults>
</compile_context>

<pallas_src>
import jax
import jax.numpy as jnp
from jax import lax
from jax.experimental import pallas as pl
from jax.experimental.pallas import tpu as pltpu


def gat_kernel(beta_ref, x_ref, adj_ref, out_ref):
    # beta_ref: SMEM (1,) f32; x_ref: VMEM (N, D); adj_ref: VMEM (N, N); out_ref: (N, D)
    x = x_ref[...]        # (N, D) f32
    adj = adj_ref[...]    # (N, N) f32
    beta = beta_ref[0]    # scalar f32

    # torch.norm(x, 2, 1) with B==1: L2 norm over the node axis -> per-feature column norms.
    sq = jnp.sum(x * x, axis=0, keepdims=True)          # (1, D)
    nrm = jnp.sqrt(sq)                                   # (1, D)
    denom = jnp.transpose(nrm) * nrm + 1e-07             # (D, D) == (N, N) since N == D

    # beta * (x @ x^T) / denom, with the divide folded into an EUP approx reciprocal.
    inv_denom = beta * pl.reciprocal(denom, approx=True)
    scores = lax.dot_general(                             # x @ x^T on the MXU, no transpose op
        x, x,
        dimension_numbers=(((1,), (1,)), ((), ())),
        preferred_element_type=jnp.float32,
    )                                                     # (N, N)
    cos = scores * inv_denom

    # masked = cos + (1 - adj) * -1e9  ==  select(adj > 0, cos, -1e9) for binary adj
    # (self-loops guarantee at least one unmasked entry per row; masked terms underflow to 0).
    masked = jnp.where(adj > 0.0, cos, -1e9)

    # Row softmax (dim=2 in torch), normalization via EUP approx reciprocal.
    m = jnp.max(masked, axis=-1, keepdims=True)
    e = jnp.exp(masked - m)
    p = e * pl.reciprocal(jnp.sum(e, axis=-1, keepdims=True), approx=True)

    # P @ x on the MXU, f32 accumulation.
    out_ref[...] = jnp.dot(p, x, preferred_element_type=jnp.float32).astype(out_ref.dtype)


def graph_attention_layer(x, adj, beta):
    """x: [B, N, D] f32, adj: [B, N, N] f32, beta: [1] f32 -> [B, N, D] f32."""
    B, N, D = x.shape
    # Reference semantics only well-defined when B*D == N (see note above).
    assert B == 1 and N == D, "GraphAttentionLayer semantics require B == 1 and N == D"

    x2 = x.reshape(N, D)      # free metadata reshape; kernel sees 2-D tiles
    adj2 = adj.reshape(N, N)

    out = pl.pallas_call(
        gat_kernel,
        out_shape=jax.ShapeDtypeStruct((N, D), x.dtype),
        # No grid: single invocation on full arrays — avoids per-step pipeline overhead.
        in_specs=[
            pl.BlockSpec(memory_space=pltpu.MemorySpace.SMEM),   # beta scalar
            pl.BlockSpec(memory_space=pltpu.MemorySpace.VMEM),   # x   (N, D)
            pl.BlockSpec(memory_space=pltpu.MemorySpace.VMEM),   # adj (N, N)
        ],
        out_specs=pl.BlockSpec(memory_space=pltpu.MemorySpace.VMEM),
    )(beta, x2, adj2)

    return out.reshape(B, N, D)


def ref_forward(x, adj, beta):
    """Pure-JAX transcription of the PyTorch forward (for verification)."""
    norm2 = jnp.linalg.norm(x, axis=1).reshape(-1, 1)                       # (B*D, 1)
    cos = beta * (x @ jnp.swapaxes(x, 1, 2)) / (norm2 @ norm2.T + 1e-07)    # (B, N, N)
    mask = (1.0 - adj) * -1000000000.0
    masked = cos + mask
    P = jax.nn.softmax(masked, axis=2)
    return P @ x


if __name__ == "__main__":
    key = jax.random.PRNGKey(0)
    k_x, k_adj, k_beta = jax.random.split(key, 3)

    B, N, D = 1, 16, 16   # module repr: "GraphAttentionLayer (16 -> 16)"
    x = jax.random.normal(k_x, (B, N, D), dtype=jnp.float32)
    adj = (jax.random.uniform(k_adj, (B, N, N)) > 0.5).astype(jnp.float32)
    adj = jnp.maximum(adj, jnp.eye(N, dtype=jnp.float32)[None])  # self-loops

    # beta = Parameter(torch.Tensor(1).uniform_(0, 1)) -> deterministic uniform(0,1) init.
    beta = jax.random.uniform(k_beta, (1,), dtype=jnp.float32)

    out = graph_attention_layer(x, adj, beta)
    out = jax.block_until_ready(out)

    ref = ref_forward(x, adj, beta)
    assert out.shape == (B, N, D)
    # Tolerance widened slightly vs. exact division because the kernel uses EUP approximate
    # reciprocals (per perf review); errors stay well below 2e-3 at these magnitudes.
    assert jnp.allclose(out, ref, atol=2e-3, rtol=2e-3), "Pallas kernel mismatch vs JAX reference"

    print("KERNEL_OK")
</pallas_src>

<mosaic_0001>
module attributes {stable_mosaic.version = 11 : i64} {
  func.func @gat_kernel(%arg0: memref<1xf32, #tpu.memory_space<smem>>, %arg1: memref<16x16xf32, #tpu.memory_space<vmem>>, %arg2: memref<16x16xf32, #tpu.memory_space<vmem>>, %arg3: memref<16x16xf32, #tpu.memory_space<vmem>>) attributes {dimension_semantics = [], scalar_prefetch = 0 : i64, scratch_operands = 0 : i64, tpu.core_type = #tpu.core_type<tc>} {
    %c0 = arith.constant 0 : index
    %c0_0 = arith.constant 0 : index
    %0 = vector.load %arg1[%c0, %c0_0] : memref<16x16xf32, #tpu.memory_space<vmem>>, vector<16x16xf32>
    %c0_1 = arith.constant 0 : index
    %c0_2 = arith.constant 0 : index
    %1 = vector.load %arg2[%c0_1, %c0_2] : memref<16x16xf32, #tpu.memory_space<vmem>>, vector<16x16xf32>
    %c0_3 = arith.constant 0 : index
    %2 = memref.load %arg0[%c0_3] : memref<1xf32, #tpu.memory_space<smem>>
    %3 = arith.mulf %0, %0 : vector<16x16xf32>
    %cst = arith.constant dense<0.000000e+00> : vector<16xf32>
    %4 = vector.multi_reduction <add>, %3, %cst [0] : vector<16x16xf32> to vector<16xf32>
    %5 = vector.shape_cast %4 : vector<16xf32> to vector<1x16xf32>
    %6 = math.sqrt %5 : vector<1x16xf32>
    %7 = tpu.transpose %6, [1, 0] : vector<1x16xf32> -> vector<16x1xf32>
    %8 = vector.broadcast %7 : vector<16x1xf32> to vector<16x16xf32>
    %9 = vector.broadcast %6 : vector<1x16xf32> to vector<16x16xf32>
    %10 = arith.mulf %8, %9 : vector<16x16xf32>
    %cst_4 = arith.constant 1.000000e-07 : f32
    %11 = vector.broadcast %cst_4 : f32 to vector<16x16xf32>
    %12 = arith.addf %10, %11 : vector<16x16xf32>
    %13 = tpu.reciprocal %12 {approx = true} : vector<16x16xf32> -> vector<16x16xf32>
    %14 = vector.broadcast %2 : f32 to vector<16x16xf32>
    %15 = arith.mulf %14, %13 : vector<16x16xf32>
    %cst_5 = arith.constant dense<0.000000e+00> : vector<16x16xf32>
    %16 = tpu.matmul %0, %0, %cst_5 {dimension_numbers = #tpu.dot_dimension_numbers<[1], [1], [0], [0], [0, 0, 1, 0], [], []>} : vector<16x16xf32>, vector<16x16xf32>, vector<16x16xf32> -> vector<16x16xf32>
    %17 = arith.mulf %16, %15 : vector<16x16xf32>
    %cst_6 = arith.constant 0.000000e+00 : f32
    %18 = vector.broadcast %cst_6 : f32 to vector<16x16xf32>
    %19 = arith.cmpf ogt, %1, %18 : vector<16x16xf32>
    %cst_7 = arith.constant -1.000000e+09 : f32
    %20 = vector.broadcast %cst_7 : f32 to vector<16x16xf32>
    %21 = arith.select %19, %17, %20 : vector<16x16xi1>, vector<16x16xf32>
    %cst_8 = arith.constant dense<0xFF800000> : vector<16xf32>
    %22 = vector.multi_reduction <maximumf>, %21, %cst_8 [1] : vector<16x16xf32> to vector<16xf32>
    %23 = vector.shape_cast %22 : vector<16xf32> to vector<16x1xf32>
    %24 = vector.broadcast %23 : vector<16x1xf32> to vector<16x16xf32>
    %25 = arith.subf %21, %24 : vector<16x16xf32>
    %26 = math.exp %25 : vector<16x16xf32>
    %cst_9 = arith.constant dense<0.000000e+00> : vector<16xf32>
    %27 = vector.multi_reduction <add>, %26, %cst_9 [1] : vector<16x16xf32> to vector<16xf32>
    %28 = vector.shape_cast %27 : vector<16xf32> to vector<16x1xf32>
    %29 = tpu.reciprocal %28 {approx = true} : vector<16x1xf32> -> vector<16x1xf32>
    %30 = vector.broadcast %29 : vector<16x1xf32> to vector<16x16xf32>
    %31 = arith.mulf %26, %30 : vector<16x16xf32>
    %cst_10 = arith.constant dense<0.000000e+00> : vector<16x16xf32>
    %32 = tpu.matmul %31, %0, %cst_10 {dimension_numbers = #tpu.dot_dimension_numbers<[1], [0], [0], [1], [0, 0, 1, 1], [], []>} : vector<16x16xf32>, vector<16x16xf32>, vector<16x16xf32> -> vector<16x16xf32>
    %c0_11 = arith.constant 0 : index
    %c0_12 = arith.constant 0 : index
    %33 = vector.load %arg3[%c0_11, %c0_12] : memref<16x16xf32, #tpu.memory_space<vmem>>, vector<16x16xf32>
    tpu.vector_store %arg3[%c0_11, %c0_12], %32 {strides = array<i32>} : memref<16x16xf32, #tpu.memory_space<vmem>>, vector<16x16xf32>,
    return
  }
}

</mosaic_0001>

<bundles_post_ra>
// kernel: tpu_custom_call.1
= control target key start
LH: loop header
LB: loop body
LE: loop exit
PB: predicated region body
PF: predicated region fallthrough
CT: control target
= control target key end

     0   :  { %9 = vsyncpa [#allocation4], 0  ;;  %s410_s0 = inlined_call_operand.<no memory space> [shape: f32[1], index: 0, kind: input, shape index: {}]   ;;  %s411_s1 = inlined_call_operand.hbm [shape: f32[16,16], index: 1, kind: input, shape index: {}]   ;;  %s412_s2 = inlined_call_operand.hbm [shape: f32[16,16], index: 2, kind: input, shape index: {}]   ;;  %s413_s3 = inlined_call_operand.hbm [shape: f32[16,16], index: 3, kind: output, shape index: {}]  }
   0x1   :  { %10 = vsyncpa [#allocation7], 0 }
   0x2   :  { %11 = vsyncpa [#allocation5], 0  ;;  %s18_s14 = sshll.u32 %s411_s1, 4  ;;  %s347_s15 = smov [#allocation3]   ;;  %s19_s14 = int_to_ptr.hbm [resolvable:$true] %s18_s14 }
   0x3   :  { %s20_s16 = sshll.u32 %s347_s15, 4  ;;  %s31_s19 = sshll.u32 %s412_s2, 4  ;;  %s21_s16 = int_to_ptr.vmem [resolvable:$true] %s20_s16  ;;  %s32_s19 = int_to_ptr.hbm [resolvable:$true] %s31_s19 }
   0x4   :  { %s348_s20 = smov 128   ;;  %s349_s21 = smov 8  }
   0x5   :  { %26 = dma.hbm_to_vmem [thread:$0]  %s19_s14, 256, %s21_s16, [#allocation4], %s348_s20, %s348_s20, %s349_s21  }
   0x6   :  { %s350_s22 = smov [#allocation6]  }
   0x7   :  { %s33_s23 = sshll.u32 %s350_s22, 4  ;;  %s34_s23 = int_to_ptr.vmem [resolvable:$true] %s33_s23 }
   0x8   :  { %39 = dma.hbm_to_vmem [thread:$0]  %s32_s19, 256, %s34_s23, [#allocation7], %s348_s20, %s348_s20, %s349_s21  }
   0x9   :  { %341 = dma.done.wait [#allocation4], 256  }
   0xa   :  { %342 = vsyncadd [#allocation4], 4294967040 }
   0xb   :  { %343 = dma.done.wait [#allocation7], 256  }
   0xc   :  { %344 = vsyncadd [#allocation7], 4294967040  ;;  %v48_v0 = vld [vmem:[#allocation3] sm:$0xff]  ;;  %v49_v1 = vld [vmem:[#allocation3 + $0x8] sm:$0xff]  ;;  %vm55_vm0 = vcmask 130048   ;;  %v351_v9 = vmov 0   ;;  %v125_v31 = vstv %s410_s0 }
   0xd   :  { %v53_v2 = vmul.f32 %v48_v0, %v48_v0  ;;  %v54_v3 = vmul.f32 %v49_v1, %v49_v1  ;;  %236 = vmatpush.xpose.msk.msra.mxu0 %vm55_vm0, %v49_v1  ;;  %242 = vmatpush.xpose.msk.msra.mxu2 %vm55_vm0, %v49_v1  ;;  %v50_v32 = vld [vmem:[#allocation6] sm:$0xff]  ;;  %v51_v40 = vld [vmem:[#allocation6 + $0x8] sm:$0xff]  ;;  %s352_s0 = smov [#allocation8]   ;;  %s222_s27 = sshll.u32 %s413_s3, 4  ;;  %s223_s27 = int_to_ptr.hbm [resolvable:$true] %s222_s27 }
   0xe   :  { %244 = vmatpush.msra.mxu3 %v49_v1  ;;  %205 = vmatpush.msra.mxu1 %v49_v1  ;;  %vm159_vm3 = vcmp.gt.f32.partialorder %v50_v32, 0.0  ;;  %vm160_vm4 = vcmp.gt.f32.partialorder %v51_v40, 0.0  ;;  %s220_s24 = sshll.u32 %s352_s0, 4  ;;  %s221_s24 = int_to_ptr.vmem [resolvable:$true] %s220_s24 }
   0xf   :  { %v56_v4 = vsel %vm55_vm0, %v53_v2, 0.0  ;;  %v57_v5 = vsel %vm55_vm0, %v54_v3, 0.0  ;;  %254 = vset.pattern.permute.xlu1 %v351_v9 }
  0x10   :  { %v58_v6 = vadd.f32 %v57_v5, %v56_v4  ;;  %245 = vmatpush.msra.mxu3 %v48_v0  ;;  %206 = vmatpush.msra.mxu1 %v48_v0 }
  0x11   :  { %237 = vmatpush.xpose.msk.msra.mxu0 %vm55_vm0, %v48_v0  ;;  %243 = vmatpush.xpose.msk.msra.mxu2 %vm55_vm0, %v48_v0 }
  0x12   :  { %v59_v7 = vrot.slane %v58_v6, 4 }
  0x14   :  { %v60_v8 = vadd.f32 %v59_v7, %v58_v6  ;;  %238 = vmatmul.msk.f32.vlgmr.msra.gmra.mxu0 %vm55_vm0, %v48_v0  ;;  %239 = vmatmul.msk.f32.vlgmr.msra.gmra.mxu2 %vm55_vm0, %v49_v1 }
  0x16   :  { %v61_v10 = vrot.slane %v60_v8, 2 }
  0x18   :  { %v62_v11 = vadd.f32 %v61_v10, %v60_v8 }
  0x1a   :  { %v63_v12 = vrot.slane %v62_v11, 1 }
  0x1c   :  { %v64_v13 = vadd.f32 %v63_v12, %v62_v11 }
  0x1e   :  { %255 = vrsqrt.f32 %v64_v13  ;;  %vm72_vm1 = vcmp.eq.f32.partialorder %v64_v13, inf  ;;  %v75_v20 = vand.u32 2147483648, %v64_v13  ;;  %vm74_vm2 = vcmp.eq.f32.partialorder %v64_v13, 0.0 }
  0x24   :  { %v256_v14 = vpop.eup %255 }
  0x25   :  { %v66_v15 = vmul.f32 %v256_v14, %v64_v13 }
  0x27   :  { %v67_v16 = vmul.f32 %v256_v14, %v66_v15 }
  0x29   :  { %v68_v17 = vmul.f32 0.5, %v67_v16 }
  0x2b   :  { %v69_v18 = vsub.f32 1.5, %v68_v17 }
  0x2d   :  { %v70_v19 = vmul.f32 %v256_v14, %v69_v18 }
  0x2f   :  { %v71_v21 = vmul.f32 %v70_v19, %v64_v13 }
  0x31   :  { %v73_v22 = vsel %vm72_vm1, %v64_v13, %v71_v21 }
  0x32   :  { %v76_v23 = vsel %vm74_vm2, %v75_v20, %v73_v22 }
  0x33   :  { %77 = vxpose.xlu0.b32.start.end [1/1] (short) (narrow) %v76_v23, 16 }
  0x91   :  { %v151_v35 = vpop.f32.mrf.mxu0 }
  0x97   :  { %v154_v42 = vpop.f32.mrf.mxu2 }
  0x9a   :  { %253 = vset.pattern.permute.xlu0 %v351_v9 }
  0xd7   :  { %v93_v24 = vpop.trf.xlu0 }
  0xd8   :  { %111 = vperm.xlu1 %254, %v93_v24  }
  0xdf   :  { %v94_v25 = vpop.trf.xlu0 }
  0xe0   :  { %116 = vperm.xlu0 %253, %v94_v25  }
 0x14a   :  { %v112_v26 = vpop.permute.xlu1 %111 }
 0x14b   :  { %v119_v27 = vmul.f32 %v112_v26, %v76_v23 }
 0x14d   :  { %v121_v28 = vadd.f32 1e-07, %v119_v27 }
 0x14f   :  { %257 = vrcp.f32 %v121_v28 }
 0x152   :  { %v117_v29 = vpop.permute.xlu0 %116 }
 0x153   :  { %v120_v30 = vmul.f32 %v117_v29, %v76_v23 }
 0x155   :  { %v258_v33 = vpop.eup %257  ;;  %v122_v34 = vadd.f32 1e-07, %v120_v30 }
 0x156   :  { %v126_v36 = vmul.f32 %v258_v33, %v125_v31 }
 0x157   :  { %259 = vrcp.f32 %v122_v34 }
 0x158   :  { %v157_v37 = vmul.f32 %v151_v35, %v126_v36 }
 0x15a   :  { %v161_v38 = vsel %vm159_vm3, %v157_v37, -1e+09 }
 0x15b   :  { %v163_v39 = vsel %vm55_vm0, %v161_v38, -inf }
 0x15c   :  { %164 = vmax.xlane.f32.xlu2 %v163_v39 }
 0x15d   :  { %v260_v41 = vpop.eup %259 }
 0x15e   :  { %v127_v43 = vmul.f32 %v260_v41, %v125_v31 }
 0x160   :  { %v158_v44 = vmul.f32 %v154_v42, %v127_v43 }
 0x162   :  { %v162_v45 = vsel %vm160_vm4, %v158_v44, -1e+09 }
 0x163   :  { %v166_v46 = vsel %vm55_vm0, %v162_v45, -inf }
 0x164   :  { %167 = vmax.xlane.f32.xlu1 %v166_v46 }
 0x1cf   :  { %v165_v47 = vpop.xlane.xlu2 %164 }
 0x1d0   :  { %v169_v50 = vsub.f32 %v161_v38, %v165_v47 }
 0x1d2   :  { %v171_v52 = vmul.f32 1.442695, %v169_v50 }
 0x1d7   :  { %v168_v48 = vpop.xlane.xlu1 %167 }
 0x1d8   :  { %v170_v49 = vsub.f32 %v162_v45, %v168_v48 }
 0x1da   :  { %v173_v51 = vmul.f32 1.442695, %v170_v49 }
 0x1dc   :  { %261 = vpow2.f32 %v173_v51 }
 0x1dd   :  { %263 = vpow2.f32 %v171_v52 }
 0x1e2   :  { %v262_v53 = vpop.eup %261 }
 0x1e3   :  { %v178_v54 = vsel %vm55_vm0, %v262_v53, 0.0  ;;  %v264_v55 = vpop.eup %263 }
 0x1e4   :  { %179 = vadd.xlane.f32.xlu2 %v178_v54  ;;  %v175_v56 = vsel %vm55_vm0, %v264_v55, 0.0 }
 0x1ec   :  { %176 = vadd.xlane.f32.xlu2 %v175_v56 }
 0x257   :  { %v180_v57 = vpop.xlane.xlu2 %179 }
 0x258   :  { %265 = vrcp.f32 %v180_v57 }
 0x25e   :  { %v266_v58 = vpop.eup %265 }
 0x25f   :  { %v177_v59 = vpop.xlane.xlu2 %176  ;;  %v184_v60 = vmul.f32 %v266_v58, %v262_v53 }
 0x260   :  { %267 = vrcp.f32 %v177_v59 }
 0x261   :  { %241 = vmatmul.msk.f32.vlgmr.msra.gmra.mxu3 %vm55_vm0, %v184_v60 }
 0x266   :  { %v268_v61 = vpop.eup %267 }
 0x267   :  { %v183_v62 = vmul.f32 %v268_v61, %v264_v55 }
 0x269   :  { %240 = vmatmul.msk.f32.vlgmr.msra.gmra.mxu1 %vm55_vm0, %v183_v62 }
 0x2e4   :  { %v211_v63 = vpop.f32.mrf.mxu3 }
 0x2e5   :  { %215 = vst.msk [vmem:[#allocation8 + $0x8] sm:$0xff] %vm55_vm0, %v211_v63 }
 0x2e6   :  { %v208_v0 = vpop.f32.mrf.mxu1 }
 0x2e7   :  { %214 = vst.msk [vmem:[#allocation8] sm:$0xff] %vm55_vm0, %v208_v0 }
 0x2e8   :  { %228 = dma.vmem_to_hbm [thread:$0]  %s221_s24, 256, %s223_s27, [#allocation5], %s348_s20, %s348_s20, %s349_s21  }
 0x2e9   :  { %345 = dma.done.wait [#allocation5], 256  }
 0x2ea   :  { %346 = vsyncadd [#allocation5], 4294967040 }
 0x2eb   :  { %233 = vsyncpa [#allocation4], 1 }
 0x2ec   :  { %234 = vsyncpa [#allocation7], 1 }
 0x2ed   :  { %235 = vsyncpa [#allocation5], 1 }

</bundles_post_ra>
